<compile_context>
chip_gen: v6e
topology: v6e:2x2x1
jax: 0.10.0
libtpu: 0.0.40
codegen_flags: <defaults>
</compile_context>

<pallas_src>
import functools

import jax
import jax.numpy as jnp
from jax.experimental import pallas as pl
from jax.experimental.pallas import tpu as pltpu


def _count_kernel(preds_ref, target_ref, out_ref, tp_ref, sup_ref, *,
                  num_classes, hw, tile_hw, preds_are_labels):
    """One (batch, spatial-tile) grid step: accumulate per-class TP / support.

    preds_ref  : (1, C, TILE_HW) logits   (4-D path)   or (1, 1, TILE_HW) labels (3-D path)
    target_ref : (1, 1, TILE_HW) int class ids
    out_ref    : (1, C, 2) int32 -- [:, :, 0] = TP, [:, :, 1] = support (per batch element)
    tp_ref/sup_ref : (C, 1) int32 VMEM accumulators (persist across the spatial axis)
    """
    j = pl.program_id(1)

    @pl.when(j == 0)
    def _():
        tp_ref[...] = jnp.zeros_like(tp_ref)
        sup_ref[...] = jnp.zeros_like(sup_ref)

    t = target_ref[0].astype(jnp.int32)                     # (1, T)

    # Mask the ragged final spatial tile (static check: hw, tile_hw are Python ints).
    if hw % tile_hw != 0:
        pos = jax.lax.broadcasted_iota(jnp.int32, t.shape, 1) + j * tile_hw
        t = jnp.where(pos < hw, t, -1)                      # -1 matches no class

    class_col = jax.lax.broadcasted_iota(jnp.int32, (num_classes, 1), 0)   # (C, 1)

    if preds_are_labels:
        # Label predictions: compare directly (no one-hot / argmax needed).
        pred_class = preds_ref[0].astype(jnp.int32)         # (1, T)
    else:
        # Argmax over the class (sublane) axis, first-match tie-break.
        x = preds_ref[0]                                    # (C, T), native dtype
        max_val = jnp.max(x, axis=0, keepdims=True)         # (1, T)
        is_max = x == max_val                               # (C, T)
        ids = jax.lax.broadcasted_iota(jnp.int32, x.shape, 0)
        pred_class = jnp.min(jnp.where(is_max, ids, num_classes),
                             axis=0, keepdims=True)         # (1, T)

    tgt_oh = t == class_col                                 # (C, T) bool, pad/ignore rows -> all False
    correct = pred_class == t                               # (1, T) bool

    tp_ref[...] += jnp.sum(jnp.logical_and(tgt_oh, correct).astype(jnp.int32),
                           axis=1, keepdims=True)           # (C, 1)
    sup_ref[...] += jnp.sum(tgt_oh.astype(jnp.int32), axis=1, keepdims=True)

    @pl.when(j == pl.num_programs(1) - 1)
    def _():
        lane_sel = jax.lax.broadcasted_iota(jnp.int32, (num_classes, 2), 1)
        out_ref[0] = jnp.where(lane_sel == 0, tp_ref[...], sup_ref[...])   # (C, 2)


def _choose_tile_hw(hw, per_token_bytes, vmem_block_budget=2 << 20, cap=8192):
    """Largest lane tile that keeps a single double-buffered block modest in VMEM."""
    t = vmem_block_budget // max(int(per_token_bytes), 1)
    t = max(128, min(int(t), cap))
    t = (t // 128) * 128
    if hw <= t:
        return hw            # full-extent block is always layout-legal
    return t                 # multiple of 128; ragged final tile masked in-kernel


@functools.partial(jax.jit, static_argnames=("num_classes",))
def seg_recall_metric(preds, target, *, num_classes):
    """Pallas implementation of SegRecallMetric.forward (per-class recall)."""
    b, h, w = target.shape
    hw = h * w
    tgt = target.reshape(b, 1, hw)                 # free reshape, native dtype

    if preds.ndim == 4:
        if preds.shape[1] != num_classes:
            raise ValueError("preds channel dim must equal num_classes")
        p = preds.reshape(b, num_classes, hw)      # free reshape; NO transpose / cast
        preds_are_labels = False
        c_block = num_classes
        per_token_bytes = num_classes * p.dtype.itemsize + tgt.dtype.itemsize
    elif preds.ndim == 3:
        p = preds.reshape(b, 1, hw)                # label predictions, native dtype
        preds_are_labels = True
        c_block = 1
        per_token_bytes = p.dtype.itemsize + tgt.dtype.itemsize
    else:
        raise ValueError("preds must be 3-D (labels) or 4-D (logits)")

    tile_hw = _choose_tile_hw(hw, per_token_bytes)
    n_tiles = (hw + tile_hw - 1) // tile_hw
    grid = (b, n_tiles)

    kernel = functools.partial(
        _count_kernel,
        num_classes=num_classes,
        hw=hw,
        tile_hw=tile_hw,
        preds_are_labels=preds_are_labels,
    )

    counts = pl.pallas_call(
        kernel,
        out_shape=jax.ShapeDtypeStruct((b, num_classes, 2), jnp.int32),
        grid_spec=pltpu.PrefetchScalarGridSpec(
            num_scalar_prefetch=0,
            grid=grid,
            in_specs=[
                pl.BlockSpec((1, c_block, tile_hw), lambda bi, j: (bi, 0, j)),
                pl.BlockSpec((1, 1, tile_hw), lambda bi, j: (bi, 0, j)),
            ],
            out_specs=pl.BlockSpec((1, num_classes, 2), lambda bi, j: (bi, 0, 0)),
            scratch_shapes=[
                pltpu.VMEM((num_classes, 1), jnp.int32),   # TP accumulator
                pltpu.VMEM((num_classes, 1), jnp.int32),   # support accumulator
            ],
        ),
        compiler_params=pltpu.CompilerParams(
            dimension_semantics=("parallel", "arbitrary"),
        ),
    )(p, tgt)

    # Tiny (B, C, 2) combine + divide in JAX (exact int32 counts, f32 only for ratio).
    tp = jnp.sum(counts[:, :, 0], axis=0).astype(jnp.float32)
    sup = jnp.sum(counts[:, :, 1], axis=0).astype(jnp.float32)
    return jnp.where(sup > 0.0, tp / jnp.maximum(sup, 1.0), 0.0)


def _reference_recall(preds, target, num_classes):
    """Pure-JAX reference for correctness checking."""
    if preds.ndim == 4:
        pred_cls = jnp.argmax(preds, axis=1).reshape(-1)
    else:
        pred_cls = preds.reshape(-1).astype(jnp.int32)
    tgt = target.reshape(-1)
    cls = jnp.arange(num_classes)
    tgt_oh = tgt[None, :] == cls[:, None]
    sup = jnp.sum(tgt_oh, axis=1).astype(jnp.float32)
    tp = jnp.sum(tgt_oh & (pred_cls[None, :] == tgt[None, :]), axis=1).astype(jnp.float32)
    return jnp.where(sup > 0, tp / jnp.maximum(sup, 1.0), 0.0)


if __name__ == "__main__":
    num_classes = 4
    key = jax.random.PRNGKey(0)
    k_preds, k_tgt = jax.random.split(key)

    # 4-D logits path: (B, C, H, W) NCHW, consumed natively by the kernel.
    preds = jax.random.normal(k_preds, (2, num_classes, 16, 16), dtype=jnp.float32)
    target = jax.random.randint(k_tgt, (2, 16, 16), 0, num_classes, dtype=jnp.int32)

    recall = jax.block_until_ready(seg_recall_metric(preds, target, num_classes=num_classes))
    ref = _reference_recall(preds, target, num_classes)
    assert recall.shape == (num_classes,)
    assert jnp.allclose(recall, ref, atol=1e-6), (recall, ref)

    # 3-D label path: (B, H, W) float class labels (as the PyTorch module produces).
    labels = jnp.argmax(preds, axis=1).astype(jnp.float32)
    recall3 = jax.block_until_ready(seg_recall_metric(labels, target, num_classes=num_classes))
    ref3 = _reference_recall(labels, target, num_classes)
    assert jnp.allclose(recall3, ref3, atol=1e-6), (recall3, ref3)

    print("KERNEL_OK")
</pallas_src>

<mosaic_0001>
module attributes {stable_mosaic.version = 11 : i64} {
  func.func @_count_kernel(%arg0: i32, %arg1: i32, %arg2: memref<1x4x256xf32, #tpu.memory_space<vmem>>, %arg3: memref<1x1x256xi32, #tpu.memory_space<vmem>>, %arg4: memref<1x4x2xi32, #tpu.memory_space<vmem>>, %arg5: memref<4x1xi32, #tpu.memory_space<vmem>>, %arg6: memref<4x1xi32, #tpu.memory_space<vmem>>) attributes {dimension_semantics = [#tpu.dimension_semantics<parallel>, #tpu.dimension_semantics<arbitrary>], iteration_bounds = array<i64: 2, 1>, scalar_prefetch = 0 : i64, scratch_operands = 2 : i64, tpu.core_type = #tpu.core_type<tc>, window_params = [{transform_indices = @transform_0, window_bounds = array<i64: 1, 4, 256>}, {transform_indices = @transform_1, window_bounds = array<i64: 1, 1, 256>}, {transform_indices = @transform_2, window_bounds = array<i64: 1, 4, 2>}]} {
    %c0_i32 = arith.constant 0 : i32
    %0 = arith.cmpi eq, %arg1, %c0_i32 : i32
    %1 = arith.extui %0 : i1 to i32
    %c0_i32_0 = arith.constant 0 : i32
    %2 = arith.cmpi ne, %1, %c0_i32_0 : i32
    scf.if %2 {
      %c0_i32_19 = arith.constant 0 : i32
      %38 = vector.broadcast %c0_i32_19 : i32 to vector<4x1xi32>
      %c0_20 = arith.constant 0 : index
      %c0_21 = arith.constant 0 : index
      %39 = vector.load %arg5[%c0_20, %c0_21] : memref<4x1xi32, #tpu.memory_space<vmem>>, vector<4x1xi32>
      tpu.vector_store %arg5[%c0_20, %c0_21], %38 {strides = array<i32>} : memref<4x1xi32, #tpu.memory_space<vmem>>, vector<4x1xi32>,
      %c0_i32_22 = arith.constant 0 : i32
      %40 = vector.broadcast %c0_i32_22 : i32 to vector<4x1xi32>
      %c0_23 = arith.constant 0 : index
      %c0_24 = arith.constant 0 : index
      %41 = vector.load %arg6[%c0_23, %c0_24] : memref<4x1xi32, #tpu.memory_space<vmem>>, vector<4x1xi32>
      tpu.vector_store %arg6[%c0_23, %c0_24], %40 {strides = array<i32>} : memref<4x1xi32, #tpu.memory_space<vmem>>, vector<4x1xi32>,
    } else {
    }
    %c0 = arith.constant 0 : index
    %c0_1 = arith.constant 0 : index
    %c0_2 = arith.constant 0 : index
    %3 = vector.load %arg3[%c0, %c0_1, %c0_2] : memref<1x1x256xi32, #tpu.memory_space<vmem>>, vector<1x1x256xi32>
    %4 = vector.shape_cast %3 : vector<1x1x256xi32> to vector<1x256xi32>
    %5 = tpu.iota {dimensions = array<i32: 0>} : vector<4x1xi32>
    %c0_3 = arith.constant 0 : index
    %c0_4 = arith.constant 0 : index
    %c0_5 = arith.constant 0 : index
    %6 = vector.load %arg2[%c0_3, %c0_4, %c0_5] : memref<1x4x256xf32, #tpu.memory_space<vmem>>, vector<1x4x256xf32>
    %7 = vector.shape_cast %6 : vector<1x4x256xf32> to vector<4x256xf32>
    %cst = arith.constant dense<0xFF800000> : vector<256xf32>
    %8 = vector.multi_reduction <maximumf>, %7, %cst [0] : vector<4x256xf32> to vector<256xf32>
    %9 = vector.shape_cast %8 : vector<256xf32> to vector<1x256xf32>
    %10 = vector.broadcast %9 : vector<1x256xf32> to vector<4x256xf32>
    %11 = arith.cmpf oeq, %7, %10 : vector<4x256xf32>
    %12 = tpu.iota {dimensions = array<i32: 0>} : vector<4x256xi32>
    %c4_i32 = arith.constant 4 : i32
    %13 = vector.broadcast %c4_i32 : i32 to vector<4x256xi32>
    %14 = arith.select %11, %12, %13 : vector<4x256xi1>, vector<4x256xi32>
    %cst_6 = arith.constant dense<2147483647> : vector<256xi32>
    %15 = vector.multi_reduction <minsi>, %14, %cst_6 [0] : vector<4x256xi32> to vector<256xi32>
    %16 = vector.shape_cast %15 : vector<256xi32> to vector<1x256xi32>
    %17 = vector.broadcast %4 : vector<1x256xi32> to vector<4x256xi32>
    %18 = vector.broadcast %5 : vector<4x1xi32> to vector<4x256xi32>
    %19 = arith.cmpi eq, %17, %18 : vector<4x256xi32>
    %20 = arith.cmpi eq, %16, %4 : vector<1x256xi32>
    %c0_7 = arith.constant 0 : index
    %c0_8 = arith.constant 0 : index
    %21 = vector.load %arg5[%c0_7, %c0_8] : memref<4x1xi32, #tpu.memory_space<vmem>>, vector<4x1xi32>
    %22 = vector.broadcast %20 : vector<1x256xi1> to vector<4x256xi1>
    %23 = arith.andi %19, %22 : vector<4x256xi1>
    %24 = arith.extui %23 : vector<4x256xi1> to vector<4x256xi32>
    %cst_9 = arith.constant dense<0> : vector<4xi32>
    %25 = vector.multi_reduction <add>, %24, %cst_9 [1] : vector<4x256xi32> to vector<4xi32>
    %26 = vector.shape_cast %25 : vector<4xi32> to vector<4x1xi32>
    %27 = arith.addi %21, %26 : vector<4x1xi32>
    %c0_10 = arith.constant 0 : index
    %c0_11 = arith.constant 0 : index
    %28 = vector.load %arg5[%c0_10, %c0_11] : memref<4x1xi32, #tpu.memory_space<vmem>>, vector<4x1xi32>
    tpu.vector_store %arg5[%c0_10, %c0_11], %27 {strides = array<i32>} : memref<4x1xi32, #tpu.memory_space<vmem>>, vector<4x1xi32>,
    %c0_12 = arith.constant 0 : index
    %c0_13 = arith.constant 0 : index
    %29 = vector.load %arg6[%c0_12, %c0_13] : memref<4x1xi32, #tpu.memory_space<vmem>>, vector<4x1xi32>
    %30 = arith.extui %19 : vector<4x256xi1> to vector<4x256xi32>
    %cst_14 = arith.constant dense<0> : vector<4xi32>
    %31 = vector.multi_reduction <add>, %30, %cst_14 [1] : vector<4x256xi32> to vector<4xi32>
    %32 = vector.shape_cast %31 : vector<4xi32> to vector<4x1xi32>
    %33 = arith.addi %29, %32 : vector<4x1xi32>
    %c0_15 = arith.constant 0 : index
    %c0_16 = arith.constant 0 : index
    %34 = vector.load %arg6[%c0_15, %c0_16] : memref<4x1xi32, #tpu.memory_space<vmem>>, vector<4x1xi32>
    tpu.vector_store %arg6[%c0_15, %c0_16], %33 {strides = array<i32>} : memref<4x1xi32, #tpu.memory_space<vmem>>, vector<4x1xi32>,
    %c0_i32_17 = arith.constant 0 : i32
    %35 = arith.cmpi eq, %arg1, %c0_i32_17 : i32
    %36 = arith.extui %35 : i1 to i32
    %c0_i32_18 = arith.constant 0 : i32
    %37 = arith.cmpi ne, %36, %c0_i32_18 : i32
    scf.if %37 {
      %38 = tpu.iota {dimensions = array<i32: 1>} : vector<4x2xi32>
      %c0_i32_19 = arith.constant 0 : i32
      %39 = vector.broadcast %c0_i32_19 : i32 to vector<4x2xi32>
      %40 = arith.cmpi eq, %38, %39 : vector<4x2xi32>
      %c0_20 = arith.constant 0 : index
      %c0_21 = arith.constant 0 : index
      %41 = vector.load %arg5[%c0_20, %c0_21] : memref<4x1xi32, #tpu.memory_space<vmem>>, vector<4x1xi32>
      %c0_22 = arith.constant 0 : index
      %c0_23 = arith.constant 0 : index
      %42 = vector.load %arg6[%c0_22, %c0_23] : memref<4x1xi32, #tpu.memory_space<vmem>>, vector<4x1xi32>
      %43 = vector.shape_cast %41 : vector<4x1xi32> to vector<4x1xi32>
      %44 = vector.broadcast %43 : vector<4x1xi32> to vector<4x2xi32>
      %45 = vector.shape_cast %42 : vector<4x1xi32> to vector<4x1xi32>
      %46 = vector.broadcast %45 : vector<4x1xi32> to vector<4x2xi32>
      %47 = arith.select %40, %44, %46 : vector<4x2xi1>, vector<4x2xi32>
      %c0_24 = arith.constant 0 : index
      %c0_25 = arith.constant 0 : index
      %c0_26 = arith.constant 0 : index
      %48 = vector.load %arg4[%c0_24, %c0_25, %c0_26] : memref<1x4x2xi32, #tpu.memory_space<vmem>>, vector<1x4x2xi32>
      %49 = vector.shape_cast %48 : vector<1x4x2xi32> to vector<4x2xi32>
      %50 = vector.shape_cast %47 : vector<4x2xi32> to vector<1x4x2xi32>
      tpu.vector_store %arg4[%c0_24, %c0_25, %c0_26], %50 {strides = array<i32>} : memref<1x4x2xi32, #tpu.memory_space<vmem>>, vector<1x4x2xi32>,
    } else {
    }
    return
  }
  func.func @transform_0(%arg0: i32, %arg1: i32) -> (i32, i32, i32) {
    %c0_i32 = arith.constant 0 : i32
    %c0_i32_0 = arith.constant 0 : i32
    return %arg0, %c0_i32, %arg1 : i32, i32, i32
  }
  func.func @transform_1(%arg0: i32, %arg1: i32) -> (i32, i32, i32) {
    %c0_i32 = arith.constant 0 : i32
    %c0_i32_0 = arith.constant 0 : i32
    return %arg0, %c0_i32, %arg1 : i32, i32, i32
  }
  func.func @transform_2(%arg0: i32, %arg1: i32) -> (i32, i32, i32) {
    %c0_i32 = arith.constant 0 : i32
    %c0_i32_0 = arith.constant 0 : i32
    %c0_i32_1 = arith.constant 0 : i32
    return %arg0, %c0_i32, %c0_i32_0 : i32, i32, i32
  }
}

</mosaic_0001>

<bundles_post_ra>
// kernel: seg_recall_metric.1
= control target key start
LH: loop header
LB: loop body
LE: loop exit
PB: predicated region body
PF: predicated region fallthrough
CT: control target
= control target key end

     0   :  { %s514_s9 = smov 0   ;;  %s516_s10 = smov 0   ;;  %s579_s0 = inlined_call_operand.vmem [shape: f32[2,4,256], index: 0, kind: input, shape index: {}]   ;;  %s580_s1 = inlined_call_operand.vmem [shape: s32[2,1,256], index: 1, kind: input, shape index: {}]   ;;  %s581_s2 = inlined_call_operand.vmem [shape: s32[2,4,2], index: 2, kind: output, shape index: {}]  }
   0x1   :  { %s518_s11 = smov 0  }
   0x2 LB: > { %s24_s12 = sadd.s32 1, %s491_s10  ;;  %p436_p0 = scmp.ge.s32.totalorder %s495_s11, 1  ;;  %s495_s11 = sphi %s518_s11, %s12_s11   ;;  %s491_s10 = sphi %s516_s10, %s583_s10   ;;  %s487_s9 = sphi %s514_s9, %s582_s9  }
   0x3   : > { %p26_p1 = scmp.ge.s32.totalorder %s24_s12, 2  ;;  %p147_p2 = scmp.lt.s32.totalorder %s495_s11, 3 }
   0x5   : > { %s585_s12 = smov (%p26_p1, %s24_s12), 0  ;;  %p148_p3 = pnand %p436_p0, %p147_p2 }
   0x6   : > { %p181_p4 = scmp.lt.s32.totalorder (!%p148_p3), %s487_s9, 1 }
   0x7   : > { %151 = sbr.rel (%p148_p3) target bundleno = 348 (0x15c), region = 28 }
   0xc   : > { %v497_v0 = vmov 0   ;;  %s587_s9 = smov (!%p181_p4, %s487_s9), 1  ;;  %vm217_vm0 = vcmask 1043456   ;;  %v211_v5 = vlaneseq  ;;  %v498_v7 = vmov 839922192  }
   0xd   : > { %470 = vset.pattern.permute.xlu0 %v497_v0  ;;  %471 = vset.pattern.permute.xlu1 %v497_v0  ;;  %s443_s13 = sshll.u32 %s587_s9, 3  ;;  %v238_v8 = vunpack.c.l.s4 %v498_v7  ;;  %s439_s17 = sshll.u32 %s587_s9, 1 }
   0xe   : > { %s188_s16 = scalar_lea.vmem %s579_s0, %s443_s13  ;;  %v212_v13 = vshrl.u32 %v211_v5, 7  ;;  %s197_s20 = scalar_lea.vmem %s580_s1, %s439_s17 }
   0xf   : > { %v213_v1 = vld [vmem:[%s188_s16] sm:$0xff]  ;;  %v239_v14 = vunpack.c.0.s8 %v238_v8  ;;  %s440_s21 = sshll.u32 %s587_s9, 2 }
  0x10   : > { %v215_v2 = vcombine.high %v213_v1, %v213_v1  ;;  %v218_v3 = vsel %vm217_vm0, %v213_v1, -inf  ;;  %v268_v33 = vsub.s32 0, %v212_v13  ;;  %v210_v34 = vld [vmem:[%s197_s20] sm:$0x3]  ;;  %v272_v37 = vsub.s32 1, %v212_v13  ;;  %s202_s24 = scalar_lea.vmem %s581_s2, %s440_s21 }
  0x11   : > { %v219_v4 = vrot.slane %v218_v3, 4  ;;  %v242_v19 = vsub.s32 %v239_v14, %v212_v13 }
  0x12   : > { %v225_v6 = vsel %vm217_vm0, %v215_v2, -inf  ;;  %v269_v40 = vrot.slane %v210_v34, %v268_v33  ;;  %v273_v43 = vrot.slane %v210_v34, %v272_v37 }
  0x13   : > { %v220_v9 = vmax.f32 %v218_v3, %v219_v4  ;;  %v226_v10 = vrot.slane %v225_v6, 4  ;;  %v243_v23 = vrot.slane %v212_v13, %v242_v19 }
  0x14   : > { %vm274_vm9 = vcmp.eq.s32.totalorder %v269_v40, %v212_v13  ;;  %vm275_vm10 = vcmp.eq.s32.totalorder %v273_v43, %v212_v13 }
  0x15   : > { %v221_v11 = vrot.slane %v220_v9, 2  ;;  %v227_v12 = vmax.f32 %v225_v6, %v226_v10  ;;  %v314_v48 = vsel %vm274_vm9, 1, %v497_v0  ;;  %v315_v49 = vsel %vm275_vm10, 1, %v497_v0 }
  0x16   : > { %v316_v52 = vsel %vm217_vm0, %v314_v48, 0  ;;  %v317_v53 = vsel %vm217_vm0, %v315_v49, 0 }
  0x17   : > { %v222_v15 = vmax.f32 %v220_v9, %v221_v11  ;;  %v228_v16 = vrot.slane %v227_v12, 2  ;;  %v318_v57 = vadd.s32 %v317_v53, %v316_v52 }
  0x19   : > { %v223_v17 = vrot.slane %v222_v15, 1  ;;  %v229_v18 = vmax.f32 %v227_v12, %v228_v16  ;;  %v320_v62 = vshrl.u32 %v318_v57, 16  ;;  %v319_v63 = vand.u32 65535, %v318_v57 }
  0x1b   : > { %v224_v20 = vmax.f32 %v222_v15, %v223_v17  ;;  %v230_v21 = vrot.slane %v229_v18, 1  ;;  %v322_v3 = vcvt.s32.f32 %v320_v62  ;;  %v321_v4 = vcvt.s32.f32 %v319_v63 }
  0x1d   : > { %v231_v22 = vmax.f32 %v229_v18, %v230_v21 }
  0x1f   : > { %v234_v24 = vcombine.low %v224_v20, %v231_v22 }
  0x21   : > { %vm236_vm1 = vcmp.eq.f32.partialorder %v213_v1, %v234_v24 }
  0x22   : > { %v244_v25 = vsel %vm236_vm1, %v243_v23, 4  ;;  %vm207_vm1 = vcmask 3072   ;;  %v337_v23 = vand.u32 127, %v211_v5 }
  0x23   : > { %v245_v26 = vcombine.high %v244_v25, %v244_v25  ;;  %v246_v27 = vsel %vm217_vm0, %v244_v25, 2147483647  ;;  %208 = vst.msk [vmem:[#allocation2] sm:$0xf] %vm207_vm1, %v497_v0  ;;  %209 = vst.msk [vmem:[#allocation3] sm:$0xf] %vm207_vm1, %v497_v0 }
  0x24   : > { %v247_v28 = vrot.slane %v246_v27, 4 }
  0x25   : > { %v256_v29 = vsel %vm217_vm0, %v245_v26, 2147483647 }
  0x26   : > { %vm248_vm2 = vcmp.lt.s32.totalorder %v246_v27, %v247_v28  ;;  %v257_v30 = vrot.slane %v256_v29, 4 }
  0x27   : > { %v249_v31 = vsel %vm248_vm2, %v246_v27, %v247_v28  ;;  %vm348_vm2 = vcmask 11264  }
  0x28   : > { %v250_v32 = vrot.slane %v249_v31, 2  ;;  %vm258_vm3 = vcmp.lt.s32.totalorder %v256_v29, %v257_v30 }
  0x29   : > { %v259_v35 = vsel %vm258_vm3, %v256_v29, %v257_v30 }
  0x2a   : > { %vm251_vm4 = vcmp.lt.s32.totalorder %v249_v31, %v250_v32  ;;  %v260_v36 = vrot.slane %v259_v35, 2  ;;  %v278_v11 = vld [vmem:[#allocation2] sm:$0xf]  ;;  %v313_v19 = vld [vmem:[#allocation3] sm:$0xf] }
  0x2b   : > { %v252_v38 = vsel %vm251_vm4, %v249_v31, %v250_v32 }
  0x2c   : > { %v253_v39 = vrot.slane %v252_v38, 1  ;;  %vm261_vm5 = vcmp.lt.s32.totalorder %v259_v35, %v260_v36 }
  0x2d   : > { %v262_v41 = vsel %vm261_vm5, %v259_v35, %v260_v36 }
  0x2e   : > { %vm254_vm6 = vcmp.lt.s32.totalorder %v252_v38, %v253_v39  ;;  %v263_v42 = vrot.slane %v262_v41, 1 }
  0x2f   : > { %v255_v44 = vsel %vm254_vm6, %v252_v38, %v253_v39 }
  0x30   : > { %vm264_vm7 = vcmp.lt.s32.totalorder %v262_v41, %v263_v42  ;;  %vm276_vm8 = vcmp.eq.s32.totalorder %v255_v44, %v269_v40 }
  0x31   : > { %v265_v45 = vsel %vm264_vm7, %v262_v41, %v263_v42  ;;  %v279_v46 = vsel %vm276_vm8, 1, %v497_v0 }
  0x32   : > { %vm277_vm11 = vcmp.eq.s32.totalorder %v265_v45, %v273_v43  ;;  %v284_v47 = vrot.slane %v279_v46, %v268_v33 }
  0x33   : > { %v280_v50 = vsel %vm277_vm11, 1, %v497_v0 }
  0x34   : > { %v288_v51 = vrot.slane %v280_v50, %v268_v33  ;;  %vm289_vm12 = vcmp.eq.s32.totalorder %v284_v47, 1 }
  0x35   : > { %vm291_vm13 = vmand %vm274_vm9, %vm289_vm12 }
  0x36   : > { %vm290_vm14 = vcmp.eq.s32.totalorder %v288_v51, 1  ;;  %v293_v54 = vsel %vm291_vm13, 1, %v497_v0 }
  0x37   : > { %vm292_vm15 = vmand %vm275_vm10, %vm290_vm14  ;;  %v295_v55 = vsel %vm217_vm0, %v293_v54, 0 }
  0x38   : > { %v294_v56 = vsel %vm292_vm15, 1, %v497_v0 }
  0x39   : > { %v296_v58 = vsel %vm217_vm0, %v294_v56, 0  ;;  %vm338_vm0 = vcmp.eq.s32.totalorder %v337_v23, 0 }
  0x3a   : > { %v297_v59 = vadd.s32 %v296_v58, %v295_v55 }
  0x3c   : > { %v299_v60 = vshrl.u32 %v297_v59, 16  ;;  %v298_v61 = vand.u32 65535, %v297_v59 }
  0x3e   : > { %v301_v1 = vcvt.s32.f32 %v299_v60  ;;  %v300_v2 = vcvt.s32.f32 %v298_v61 }
  0x40   : > { %304 = vadd.xlane.f32.xlu0 %v301_v1  ;;  %302 = vadd.xlane.f32.xlu1 %v300_v2 }
  0x44   : > { %325 = vadd.xlane.f32.xlu0 %v322_v3  ;;  %323 = vadd.xlane.f32.xlu1 %v321_v4 }
  0xc9   : > { %v305_v6 = vpop.xlane.xlu0 %304  ;;  %v303_v7 = vpop.xlane.xlu1 %302 }
  0xca   : > { %v307_v8 = vcvt.f32.s32 %v305_v6  ;;  %v306_v9 = vcvt.f32.s32 %v303_v7 }
  0xcc   : > { %v308_v10 = vshll.u32 %v307_v8, 16 }
  0xcd   : > { %v326_v12 = vpop.xlane.xlu0 %325  ;;  %v324_v13 = vpop.xlane.xlu1 %323 }
  0xce   : > { %v309_v14 = vadd.s32 %v308_v10, %v306_v9  ;;  %v328_v15 = vcvt.f32.s32 %v326_v12  ;;  %v327_v16 = vcvt.f32.s32 %v324_v13 }
  0xd0   : > { %v310_v17 = vadd.s32 %v309_v14, %v278_v11  ;;  %v329_v18 = vshll.u32 %v328_v15, 16 }
  0xd2   : > { %312 = vst.msk [vmem:[#allocation2] sm:$0xf] %vm207_vm1, %v310_v17  ;;  %v330_v20 = vadd.s32 %v329_v18, %v327_v16 }
  0xd4   : > { %v331_v21 = vadd.s32 %v330_v20, %v313_v19 }
  0xd6   : > { %332 = vst.msk [vmem:[#allocation3] sm:$0xf] %vm207_vm1, %v331_v21 }
  0xd9   : > { %v339_v0 = vld [vmem:[#allocation2] sm:$0xf] }
  0xda   : > { %342 = vperm.xlu0 %470, %v339_v0  }
  0xdd   : > { %v340_v22 = vld [vmem:[#allocation3] sm:$0xf] }
  0xde   : > { %345 = vperm.xlu1 %471, %v340_v22  }
 0x155   : > { %v343_v24 = vpop.permute.xlu0 %342 }
 0x159   : > { %v346_v25 = vpop.permute.xlu1 %345 }
 0x15a   : > { %v347_v26 = vsel %vm338_vm0, %v343_v24, %v346_v25 }
 0x15b   : > { %349 = vst.msk [vmem:[%s202_s24] sm:$0xf] %vm348_vm2, %v347_v26 }
 0x15c PF: > { %s12_s11 = sadd.s32 1, %s495_s11   ;;  %s582_s9 = smov %s491_s10 }
 0x15d   : > { %p9_p5 = scmp.ge.s32.totalorder %s12_s11, 4   ;;  %s583_s10 = smov %s585_s12 }
 0x15f   :  { %11 = sbr.rel (!%p9_p5) target bundleno = 2 (0x2), region = 69 }

</bundles_post_ra>
